<compile_context>
chip_gen: v7x
topology: tpu7x:2x2x1
jax: 0.10.0
libtpu: 0.0.40
codegen_flags: <defaults>
</compile_context>

<pallas_src>
import jax
import jax.numpy as jnp
from jax.experimental import pallas as pl
from jax.experimental.pallas import tpu as pltpu


BERT_DIM = 384      # pooled_output width from the pretrained model
HIDDEN = 12         # hidden_size
TAB_DIM = 20        # tabular feature width (linear_2 in_features = hidden + 20)
EPS = 1e-12         # torch.nn.functional.normalize default eps


def _round_up(x, m):
    return ((x + m - 1) // m) * m


def _fakenews_kernel(pooled_ref, tab_ref, w1_ref, b1_ref, w2a_ref, w2b_ref,
                     b2_ref, out_ref):
    pooled = pooled_ref[...]                       # (TB, 384) bf16
    tab = tab_ref[...]                             # (TB, 20)  f32

    # dropout_1 (eval) -> identity; linear_1 (MXU, f32 accumulate); relu.
    h = jnp.dot(pooled, w1_ref[...], preferred_element_type=jnp.float32)
    h = jnp.maximum(h + b1_ref[...], 0.0)          # (TB, 12) f32

    # F.normalize(p=2, dim=1) folded into the logit:
    #   (x / max(||x||, eps)) . w  ==  (x . w) * min(rsqrt(sum(x^2)), 1/eps)
    # The two 1-output-column matmuls of linear_2 are done as VPU multiply +
    # lane reduction (w2 rows broadcast over the batch tile) instead of
    # wasting the MXU on N=1 work.
    s1 = jnp.sum(h * w2a_ref[...], axis=1, keepdims=True)      # (TB, 1)
    s2 = jnp.sum(tab * w2b_ref[...], axis=1, keepdims=True)    # (TB, 1)
    inv1 = jnp.minimum(
        jax.lax.rsqrt(jnp.sum(h * h, axis=1, keepdims=True)), 1.0 / EPS)
    inv2 = jnp.minimum(
        jax.lax.rsqrt(jnp.sum(tab * tab, axis=1, keepdims=True)), 1.0 / EPS)

    logits = s1 * inv1 + s2 * inv2 + b2_ref[...]   # (TB, 1)

    # dropout_2 (eval) -> identity; sigmoid.
    out_ref[...] = jax.nn.sigmoid(logits)


def fakenews_forward(pooled, tabular, w1, b1, w2, b2, *, tile_batch=2048):
    """pooled: (B,384) f32, tabular: (B,20) f32,
       w1: (384,12), b1: (12,), w2: (32,1), b2: (1,) -> (B,1) f32."""
    B = pooled.shape[0]

    # Batch tile: multiple of 8 (sublanes); cap so 2 x TB x 384 x 2B pooled
    # double-buffers stay far under the smallest scoped-VMEM budget (v5e 16MiB,
    # v7x 32MiB default).  TB=2048 -> 1.5 MiB/buffer.
    TB = min(int(tile_batch), _round_up(B, 8))
    TB = _round_up(TB, 8)
    grid_b = pl.cdiv(B, TB)
    B_pad = grid_b * TB

    if B_pad != B:
        pad = B_pad - B
        pooled = jnp.pad(pooled, ((0, pad), (0, 0)))
        tabular = jnp.pad(tabular, ((0, pad), (0, 0)))

    # bf16 for the dominant HBM stream (pooled) and its weight; MXU accumulates
    # in f32 so accuracy impact is ~1e-3 at the logit level.
    pooled_bf16 = pooled.astype(jnp.bfloat16)
    w1_bf16 = w1.astype(jnp.bfloat16)

    b1_2d = b1.reshape(1, HIDDEN).astype(jnp.float32)
    b2_2d = b2.reshape(1, 1).astype(jnp.float32)
    # linear_2 weight split into two broadcast rows (hidden part / tabular part)
    w2a_row = w2[:HIDDEN, 0].reshape(1, HIDDEN).astype(jnp.float32)
    w2b_row = w2[HIDDEN:, 0].reshape(1, TAB_DIM).astype(jnp.float32)

    const = lambda shape: pl.BlockSpec(shape, lambda i: (0,) * len(shape))

    out_pad = pl.pallas_call(
        _fakenews_kernel,
        out_shape=jax.ShapeDtypeStruct((B_pad, 1), jnp.float32),
        grid=(grid_b,),
        in_specs=[
            pl.BlockSpec((TB, BERT_DIM), lambda i: (i, 0)),   # pooled (tiled)
            pl.BlockSpec((TB, TAB_DIM), lambda i: (i, 0)),    # tabular (tiled)
            const((BERT_DIM, HIDDEN)),                        # w1 (resident)
            const((1, HIDDEN)),                               # b1
            const((1, HIDDEN)),                               # w2 hidden row
            const((1, TAB_DIM)),                              # w2 tabular row
            const((1, 1)),                                    # b2
        ],
        out_specs=pl.BlockSpec((TB, 1), lambda i: (i, 0)),
        compiler_params=pltpu.CompilerParams(
            dimension_semantics=("parallel",)),
    )(pooled_bf16, tabular, w1_bf16, b1_2d, w2a_row, w2b_row, b2_2d)

    return out_pad[:B]


def fakenews_reference(pooled, tabular, w1, b1, w2, b2):
    h = jnp.maximum(pooled @ w1 + b1, 0.0)
    n1 = h / jnp.maximum(jnp.linalg.norm(h, axis=1, keepdims=True), EPS)
    n2 = tabular / jnp.maximum(
        jnp.linalg.norm(tabular, axis=1, keepdims=True), EPS)
    comb = jnp.concatenate([n1, n2], axis=1)
    return jax.nn.sigmoid(comb @ w2 + b2)


if __name__ == "__main__":
    key = jax.random.PRNGKey(0)
    k_pool, k_tab, k_w1, k_b1, k_w2, k_b2 = jax.random.split(key, 6)

    B = 12  # not a multiple of the tile -> exercises padding + tail slicing
    pooled = jax.random.normal(k_pool, (B, BERT_DIM), dtype=jnp.float32)
    tabular = jax.random.normal(k_tab, (B, TAB_DIM), dtype=jnp.float32)

    # Deterministic synthetic parameters (shapes match the torch module).
    w1 = jax.random.normal(k_w1, (BERT_DIM, HIDDEN), dtype=jnp.float32) * 0.05
    b1 = jax.random.normal(k_b1, (HIDDEN,), dtype=jnp.float32) * 0.05
    w2 = jax.random.normal(k_w2, (HIDDEN + TAB_DIM, 1), dtype=jnp.float32) * 0.1
    b2 = jax.random.normal(k_b2, (1,), dtype=jnp.float32) * 0.1

    # tile_batch=8 at test scale -> grid of 2 steps (exercises the batch grid).
    out = fakenews_forward(pooled, tabular, w1, b1, w2, b2, tile_batch=8)
    out = jax.block_until_ready(out)

    # Reference on the bf16-rounded inputs the kernel actually consumes.
    pooled_r = pooled.astype(jnp.bfloat16).astype(jnp.float32)
    w1_r = w1.astype(jnp.bfloat16).astype(jnp.float32)
    ref = fakenews_reference(pooled_r, tabular, w1_r, b1, w2, b2)

    assert out.shape == (B, 1)
    assert jnp.allclose(out, ref, atol=2e-3, rtol=2e-3), (
        float(jnp.max(jnp.abs(out - ref))))
    print("KERNEL_OK")
</pallas_src>

<mosaic_0001>
module attributes {stable_mosaic.version = 11 : i64} {
  func.func @_fakenews_kernel(%arg0: i32, %arg1: memref<8x384xbf16, #tpu.memory_space<vmem>>, %arg2: memref<8x20xf32, #tpu.memory_space<vmem>>, %arg3: memref<384x12xbf16, #tpu.memory_space<vmem>>, %arg4: memref<1x12xf32, #tpu.memory_space<vmem>>, %arg5: memref<1x12xf32, #tpu.memory_space<vmem>>, %arg6: memref<1x20xf32, #tpu.memory_space<vmem>>, %arg7: memref<1x1xf32, #tpu.memory_space<vmem>>, %arg8: memref<8x1xf32, #tpu.memory_space<vmem>>) attributes {dimension_semantics = [#tpu.dimension_semantics<parallel>], iteration_bounds = array<i64: 2>, scalar_prefetch = 0 : i64, scratch_operands = 0 : i64, tpu.core_type = #tpu.core_type<tc>, window_params = [{transform_indices = @transform_0, window_bounds = array<i64: 8, 384>}, {transform_indices = @transform_1, window_bounds = array<i64: 8, 20>}, {pipeline_mode = #tpu.pipeline_mode<synchronous>, transform_indices = @transform_2, window_bounds = array<i64: 384, 12>}, {pipeline_mode = #tpu.pipeline_mode<synchronous>, transform_indices = @transform_3, window_bounds = array<i64: 1, 12>}, {pipeline_mode = #tpu.pipeline_mode<synchronous>, transform_indices = @transform_4, window_bounds = array<i64: 1, 12>}, {pipeline_mode = #tpu.pipeline_mode<synchronous>, transform_indices = @transform_5, window_bounds = array<i64: 1, 20>}, {pipeline_mode = #tpu.pipeline_mode<synchronous>, transform_indices = @transform_6, window_bounds = array<i64: 1, 1>}, {transform_indices = @transform_7, window_bounds = array<i64: 8, 1>}]} {
    %c0 = arith.constant 0 : index
    %c0_0 = arith.constant 0 : index
    %0 = vector.load %arg1[%c0, %c0_0] : memref<8x384xbf16, #tpu.memory_space<vmem>>, vector<8x384xbf16>
    %c0_1 = arith.constant 0 : index
    %c0_2 = arith.constant 0 : index
    %1 = vector.load %arg2[%c0_1, %c0_2] : memref<8x20xf32, #tpu.memory_space<vmem>>, vector<8x20xf32>
    %c0_3 = arith.constant 0 : index
    %c0_4 = arith.constant 0 : index
    %2 = vector.load %arg3[%c0_3, %c0_4] : memref<384x12xbf16, #tpu.memory_space<vmem>>, vector<384x12xbf16>
    %cst = arith.constant dense<0.000000e+00> : vector<8x12xf32>
    %3 = tpu.matmul %0, %2, %cst {dimension_numbers = #tpu.dot_dimension_numbers<[1], [0], [0], [1], [0, 0, 1, 1], [], []>} : vector<8x384xbf16>, vector<384x12xbf16>, vector<8x12xf32> -> vector<8x12xf32>
    %c0_5 = arith.constant 0 : index
    %c0_6 = arith.constant 0 : index
    %4 = vector.load %arg4[%c0_5, %c0_6] : memref<1x12xf32, #tpu.memory_space<vmem>>, vector<1x12xf32>
    %5 = vector.broadcast %4 : vector<1x12xf32> to vector<8x12xf32>
    %6 = arith.addf %3, %5 : vector<8x12xf32>
    %cst_7 = arith.constant 0.000000e+00 : f32
    %7 = vector.broadcast %cst_7 : f32 to vector<8x12xf32>
    %8 = arith.maximumf %6, %7 : vector<8x12xf32>
    %c0_8 = arith.constant 0 : index
    %c0_9 = arith.constant 0 : index
    %9 = vector.load %arg5[%c0_8, %c0_9] : memref<1x12xf32, #tpu.memory_space<vmem>>, vector<1x12xf32>
    %10 = vector.broadcast %9 : vector<1x12xf32> to vector<8x12xf32>
    %11 = arith.mulf %8, %10 : vector<8x12xf32>
    %cst_10 = arith.constant dense<0.000000e+00> : vector<8xf32>
    %12 = vector.multi_reduction <add>, %11, %cst_10 [1] : vector<8x12xf32> to vector<8xf32>
    %13 = vector.shape_cast %12 : vector<8xf32> to vector<8x1xf32>
    %c0_11 = arith.constant 0 : index
    %c0_12 = arith.constant 0 : index
    %14 = vector.load %arg6[%c0_11, %c0_12] : memref<1x20xf32, #tpu.memory_space<vmem>>, vector<1x20xf32>
    %15 = vector.broadcast %14 : vector<1x20xf32> to vector<8x20xf32>
    %16 = arith.mulf %1, %15 : vector<8x20xf32>
    %cst_13 = arith.constant dense<0.000000e+00> : vector<8xf32>
    %17 = vector.multi_reduction <add>, %16, %cst_13 [1] : vector<8x20xf32> to vector<8xf32>
    %18 = vector.shape_cast %17 : vector<8xf32> to vector<8x1xf32>
    %19 = arith.mulf %8, %8 : vector<8x12xf32>
    %cst_14 = arith.constant dense<0.000000e+00> : vector<8xf32>
    %20 = vector.multi_reduction <add>, %19, %cst_14 [1] : vector<8x12xf32> to vector<8xf32>
    %21 = vector.shape_cast %20 : vector<8xf32> to vector<8x1xf32>
    %22 = math.rsqrt %21 : vector<8x1xf32>
    %cst_15 = arith.constant 9.99999995E+11 : f32
    %23 = vector.broadcast %cst_15 : f32 to vector<8x1xf32>
    %24 = arith.minimumf %22, %23 : vector<8x1xf32>
    %25 = arith.mulf %1, %1 : vector<8x20xf32>
    %cst_16 = arith.constant dense<0.000000e+00> : vector<8xf32>
    %26 = vector.multi_reduction <add>, %25, %cst_16 [1] : vector<8x20xf32> to vector<8xf32>
    %27 = vector.shape_cast %26 : vector<8xf32> to vector<8x1xf32>
    %28 = math.rsqrt %27 : vector<8x1xf32>
    %cst_17 = arith.constant 9.99999995E+11 : f32
    %29 = vector.broadcast %cst_17 : f32 to vector<8x1xf32>
    %30 = arith.minimumf %28, %29 : vector<8x1xf32>
    %31 = arith.mulf %13, %24 : vector<8x1xf32>
    %32 = arith.mulf %18, %30 : vector<8x1xf32>
    %33 = arith.addf %31, %32 : vector<8x1xf32>
    %c0_18 = arith.constant 0 : index
    %c0_19 = arith.constant 0 : index
    %34 = vector.load %arg7[%c0_18, %c0_19] : memref<1x1xf32, #tpu.memory_space<vmem>>, vector<1x1xf32>
    %35 = vector.broadcast %34 : vector<1x1xf32> to vector<8x1xf32>
    %36 = arith.addf %33, %35 : vector<8x1xf32>
    %37 = arith.negf %36 : vector<8x1xf32>
    %38 = math.exp %37 : vector<8x1xf32>
    %cst_20 = arith.constant 1.000000e+00 : f32
    %39 = vector.broadcast %cst_20 : f32 to vector<8x1xf32>
    %40 = arith.addf %39, %38 : vector<8x1xf32>
    %41 = arith.divf %39, %40 : vector<8x1xf32>
    %c0_21 = arith.constant 0 : index
    %c0_22 = arith.constant 0 : index
    %42 = vector.load %arg8[%c0_21, %c0_22] : memref<8x1xf32, #tpu.memory_space<vmem>>, vector<8x1xf32>
    tpu.vector_store %arg8[%c0_21, %c0_22], %41 {strides = array<i32>} : memref<8x1xf32, #tpu.memory_space<vmem>>, vector<8x1xf32>,
    return
  }
  func.func @transform_0(%arg0: i32) -> (i32, i32) {
    %c0_i32 = arith.constant 0 : i32
    %c0_i32_0 = arith.constant 0 : i32
    return %arg0, %c0_i32 : i32, i32
  }
  func.func @transform_1(%arg0: i32) -> (i32, i32) {
    %c0_i32 = arith.constant 0 : i32
    %c0_i32_0 = arith.constant 0 : i32
    return %arg0, %c0_i32 : i32, i32
  }
  func.func @transform_2(%arg0: i32) -> (i32, i32) {
    %c0_i32 = arith.constant 0 : i32
    %c0_i32_0 = arith.constant 0 : i32
    %c0_i32_1 = arith.constant 0 : i32
    return %c0_i32, %c0_i32_0 : i32, i32
  }
  func.func @transform_3(%arg0: i32) -> (i32, i32) {
    %c0_i32 = arith.constant 0 : i32
    %c0_i32_0 = arith.constant 0 : i32
    %c0_i32_1 = arith.constant 0 : i32
    return %c0_i32, %c0_i32_0 : i32, i32
  }
  func.func @transform_4(%arg0: i32) -> (i32, i32) {
    %c0_i32 = arith.constant 0 : i32
    %c0_i32_0 = arith.constant 0 : i32
    %c0_i32_1 = arith.constant 0 : i32
    return %c0_i32, %c0_i32_0 : i32, i32
  }
  func.func @transform_5(%arg0: i32) -> (i32, i32) {
    %c0_i32 = arith.constant 0 : i32
    %c0_i32_0 = arith.constant 0 : i32
    %c0_i32_1 = arith.constant 0 : i32
    return %c0_i32, %c0_i32_0 : i32, i32
  }
  func.func @transform_6(%arg0: i32) -> (i32, i32) {
    %c0_i32 = arith.constant 0 : i32
    %c0_i32_0 = arith.constant 0 : i32
    %c0_i32_1 = arith.constant 0 : i32
    return %c0_i32, %c0_i32_0 : i32, i32
  }
  func.func @transform_7(%arg0: i32) -> (i32, i32) {
    %c0_i32 = arith.constant 0 : i32
    %c0_i32_0 = arith.constant 0 : i32
    return %arg0, %c0_i32 : i32, i32
  }
}

</mosaic_0001>

<bundles_post_ra>
// kernel: tpu_custom_call.1
= control target key start
LH: loop header
LB: loop body
LE: loop exit
PB: predicated region body
PF: predicated region fallthrough
CT: control target
= control target key end

     0   :  { %s903_s26 = smov 0   ;;  %s1016_s0 = inlined_call_operand.vmem [shape: bf16[16,384], index: 0, kind: input, shape index: {}]   ;;  %s1017_s1 = inlined_call_operand.vmem [shape: f32[16,20], index: 1, kind: input, shape index: {}]   ;;  %s1018_s2 = inlined_call_operand.vmem [shape: bf16[384,12], index: 2, kind: input, shape index: {}]   ;;  %s1019_s3 = inlined_call_operand.vmem [shape: f32[1,12], index: 3, kind: input, shape index: {}]   ;;  %s1020_s4 = inlined_call_operand.vmem [shape: f32[1,12], index: 4, kind: input, shape index: {}]   ;;  %s1021_s5 = inlined_call_operand.vmem [shape: f32[1,20], index: 5, kind: input, shape index: {}]   ;;  %s1022_s6 = inlined_call_operand.<no memory space> [shape: f32[1,1], index: 6, kind: input, shape index: {}]   ;;  %s1023_s7 = inlined_call_operand.vmem [shape: f32[16,1], index: 7, kind: output, shape index: {}]  }
   0x1   :  { %v12_v0 = vstv %s1022_s6 }
   0x2   :  { %13 = vst [vmem:[#allocation2] sm:$0x1] %v12_v0 }
   0x3 LB: > { %s711_s27 = sadd.s32 4294967295, %s856_s26   ;;  %p715_p0 = scmp.ge.s32.totalorder %s856_s26, 1  ;;  %s856_s26 = sphi %s903_s26, %s19_s26  }
   0x4   : > { %p248_p1 = scmp.lt.s32.totalorder %s856_s26, 3 }
   0x6   : > { %p249_p2 = pnand %p715_p0, %p248_p1 }
   0x7   : > { %v815_v1 = vld [vmem:[%s1018_s2 + $0x40] sm:$0xff] (!%p249_p2)   ;;  %v858_v3 = vmov (!%p249_p2), 0.0   ;;  %v818_v5 = vld [vmem:[%s1018_s2 + $0x48] sm:$0xff] (!%p249_p2)   ;;  %vm859_vm0 = vmmov (!%p249_p2), 0   ;;  %v821_v8 = vld [vmem:[%s1018_s2 + $0x50] sm:$0xff] (!%p249_p2)   ;;  %p283_p3 = scmp.lt.s32.totalorder (!%p249_p2), %s711_s27, 1 }
   0x8   : > { %252 = sbr.rel (%p249_p2) target bundleno = 456 (0x1c8), region = 48  ;;  %v816_v2 = vld [vmem:[%s1018_s2] sm:$0xff] (!%p249_p2)   ;;  %784 = vmatprep.subr.bf16.mxu1 (!%p249_p2), %v858_v3  ;;  %753 = vmatprep.subr.bf16.mxu0 (!%p249_p2), %v815_v1  ;;  %v819_v6 = vld [vmem:[%s1018_s2 + $0x8] sm:$0xff] (!%p249_p2)   ;;  %v822_v9 = vld [vmem:[%s1018_s2 + $0x10] sm:$0xff] (!%p249_p2)   ;;  %vm599_vm1 = vcmask (!%p249_p2), 97280   ;;  %vm611_vm2 = vcmask (!%p249_p2), 162816  }
   0x9   : > { %v817_v4 = vld [vmem:[%s1018_s2 + $0x80] sm:$0xff] (!%p249_p2)   ;;  %754 = vmatpush3.bf16.msra.mxu0 (!%p249_p2), %v816_v2  ;;  %800 = vmatprep.mubr.msk.bf16.mxu1 (!%p249_p2), %vm859_vm0, %v858_v3  ;;  %v820_v7 = vld [vmem:[%s1018_s2 + $0x88] sm:$0xff] (!%p249_p2)   ;;  %v823_v10 = vld [vmem:[%s1018_s2 + $0x90] sm:$0xff] (!%p249_p2)   ;;  %vm644_vm3 = vcmask (!%p249_p2), 7168  }
   0xa   : > { %785 = vmatpush3.bf16.msra.mxu1 (!%p249_p2), %v817_v4  ;;  %755 = vmatprep.subr.bf16.mxu0 (!%p249_p2), %v818_v5  ;;  %v824_v11 = vld [vmem:[%s1018_s2 + $0x58] sm:$0xff] (!%p249_p2)   ;;  %v827_v14 = vld [vmem:[%s1018_s2 + $0x60] sm:$0xff] (!%p249_p2)   ;;  %v830_v17 = vld [vmem:[%s1018_s2 + $0x68] sm:$0xff] (!%p249_p2)  }
   0xb   : > { %786 = vmatprep.subr.bf16.mxu1 (!%p249_p2), %v858_v3  ;;  %v825_v12 = vld [vmem:[%s1018_s2 + $0x18] sm:$0xff] (!%p249_p2)   ;;  %v828_v15 = vld [vmem:[%s1018_s2 + $0x20] sm:$0xff] (!%p249_p2)   ;;  %v831_v18 = vld [vmem:[%s1018_s2 + $0x28] sm:$0xff] (!%p249_p2)  }
   0xc   : > { %v826_v13 = vld [vmem:[%s1018_s2 + $0x98] sm:$0xff] (!%p249_p2)   ;;  %v829_v16 = vld [vmem:[%s1018_s2 + $0xa0] sm:$0xff] (!%p249_p2)   ;;  %v832_v19 = vld [vmem:[%s1018_s2 + $0xa8] sm:$0xff] (!%p249_p2)  }
   0xd   : > { %756 = vmatpush3.bf16.msra.mxu0 (!%p249_p2), %v819_v6  ;;  %v833_v20 = vld [vmem:[%s1018_s2 + $0x70] sm:$0xff] (!%p249_p2)   ;;  %v836_v24 = vld [vmem:[%s1018_s2 + $0x78] sm:$0xff] (!%p249_p2)   ;;  %v719_v32 = vld [vmem:[%s1019_s3] ss:$0 sm:$0xff] (!%p249_p2) }
   0xe   : > { %787 = vmatpush3.bf16.msra.mxu1 (!%p249_p2), %v820_v7  ;;  %757 = vmatprep.subr.bf16.mxu0 (!%p249_p2), %v821_v8  ;;  %v834_v21 = vld [vmem:[%s1018_s2 + $0x30] sm:$0xff] (!%p249_p2)   ;;  %v837_v26 = vld [vmem:[%s1018_s2 + $0x38] sm:$0xff] (!%p249_p2)   ;;  %v747_v42 = vld [vmem:[%s1020_s4] ss:$0 sm:$0xff] (!%p249_p2) }
   0xf   : > { %788 = vmatprep.subr.bf16.mxu1 %v858_v3  ;;  %s1025_s27 = smov (!%p283_p3, %s711_s27), 1  ;;  %v835_v22 = vld [vmem:[%s1018_s2 + $0xb0] sm:$0xff]   ;;  %v841_v27 = vld [vmem:[%s1018_s2 + $0xb8] sm:$0xff]   ;;  %v748_v44 = vld [vmem:[%s1021_s5] ss:$0 sm:$0xff] }
  0x10   : > { %s804_s14 = smul.u32 12, %s1025_s27  ;;  %v749_v0 = vld [vmem:[#allocation2] ss:$0 sm:$0xff] }
  0x11   : > { %758 = vmatpush3.bf16.msra.mxu0 %v822_v9 }
  0x12   : > { %789 = vmatpush3.bf16.msra.mxu1 %v823_v10  ;;  %759 = vmatprep.subr.bf16.mxu0 %v824_v11  ;;  %s287_s23 = scalar_lea.vmem %s1016_s0, %s804_s14  ;;  %s717_s14 = sshll.u32 %s1025_s27, 3 }
  0x13   : > { %790 = vmatprep.subr.bf16.mxu1 %v858_v3  ;;  %v297_v23 = vld [vmem:[%s287_s23] sm:$0xff]  ;;  %v840_v29 = vld [vmem:[%s287_s23 + $0x8] ss:$0 sps:$4 sm:$0xff]   ;;  %s291_s17 = scalar_lea.vmem %s1017_s1, %s717_s14  ;;  %s295_s24 = scalar_lea.vmem %s1023_s7, %s717_s14 }
  0x14   : > { %v721_v25 = vcombine.high %v297_v23, %v297_v23  ;;  %v720_v28 = vcombine.low %v297_v23, %v297_v23  ;;  %v299_v43 = vld [vmem:[%s291_s17] sm:$0xff] }
  0x15   : > { %760 = vmatpush3.bf16.msra.mxu0 %v825_v12  ;;  %v621_v48 = vmul.f32 %v299_v43, %v299_v43  ;;  %v610_v49 = vmul.f32 %v748_v44, %v299_v43 }
  0x16   : > { %791 = vmatpush3.bf16.msra.mxu1 %v826_v13  ;;  %761 = vmatprep.subr.bf16.mxu0 %v827_v14 }
  0x17   : > { %792 = vmatprep.subr.bf16.mxu1 %v858_v3  ;;  %542 = vmatprep.mubr.bf16.mxu0 %v721_v25  ;;  %v622_v52 = vsel %vm611_vm2, %v621_v48, 0.0  ;;  %v612_v53 = vsel %vm611_vm2, %v610_v49, 0.0 }
  0x19   : > { %762 = vmatpush3.bf16.msra.mxu0 %v828_v15 }
  0x1a   : > { %793 = vmatpush3.bf16.msra.mxu1 %v829_v16  ;;  %763 = vmatprep.subr.bf16.mxu0 %v830_v17 }
  0x1b   : > { %794 = vmatprep.subr.bf16.mxu1 %v858_v3 }
  0x1d   : > { %764 = vmatpush3.bf16.msra.mxu0 %v831_v18 }
  0x1e   : > { %795 = vmatpush3.bf16.msra.mxu1 %v832_v19  ;;  %765 = vmatprep.subr.bf16.mxu0 %v833_v20 }
  0x1f   : > { %796 = vmatprep.subr.bf16.mxu1 %v858_v3 }
  0x21   : > { %766 = vmatpush3.bf16.msra.mxu0 %v834_v21 }
  0x22   : > { %797 = vmatpush3.bf16.msra.mxu1 %v835_v22  ;;  %767 = vmatprep.subr.bf16.mxu0 %v836_v24 }
  0x23   : > { %798 = vmatprep.subr.bf16.mxu1 %v858_v3 }
  0x25   : > { %768 = vmatpush3.bf16.msra.mxu0 %v837_v26 }
  0x26   : > { %799 = vmatpush3.bf16.msra.mxu1 %v841_v27 }
  0x28   : > { %543 = vmatmul.mubr.bf16.vlgmr.msra.gmra.mrb[0].mxu0 %v720_v28 }
  0x29   : > { %801 = vmatmul.mubr.bf16.vlgmr.msra.gmra.mrb[0].mxu1 %v840_v29 }
  0xfb   : > { %v769_v30 = vpop.f32.mrb[0].mxu0 }
  0xfc   : > { %v770_v31 = vpop.f32.mrb[1].mxu0  ;;  %v584_v33 = vpop.f32.mrb[0].mxu1 }
  0xfd   : > { %v771_v34 = vadd.f32 %v770_v31, %v769_v30  ;;  %v772_v35 = vpop.f32.mrb[2].mxu0  ;;  %v802_v36 = vpop.f32.mrb[1].mxu1 }
  0xfe   : > { %v773_v37 = vpop.f32.mrb[3].mxu0  ;;  %v587_v38 = vpop.f32.mrb[2].mxu1 }
  0xff   : > { %v545_v39 = vadd.f32 %v771_v34, %v719_v32  ;;  %v803_v40 = vpop.f32.mrb[3].mxu1 }
 0x101   : > { %v585_v41 = vadd.f32 %v584_v33, %v545_v39 }
 0x103   : > { %v590_v45 = vmax.f32 %v585_v41, 0.0 }
 0x105   : > { %v615_v46 = vmul.f32 %v590_v45, %v590_v45  ;;  %v598_v47 = vmul.f32 %v747_v42, %v590_v45 }
 0x107   : > { %v616_v50 = vsel %vm599_vm1, %v615_v46, 0.0  ;;  %v600_v51 = vsel %vm599_vm1, %v598_v47, 0.0 }
 0x108   : > { %617 = vadd.xlane.f32.xlu0 %v616_v50  ;;  %601 = vadd.xlane.f32.xlu1 %v600_v51 }
 0x10c   : > { %623 = vadd.xlane.f32.xlu0 %v622_v52  ;;  %613 = vadd.xlane.f32.xlu1 %v612_v53 }
 0x195   : > { %v618_v54 = vpop.xlane.xlu0 %617  ;;  %v602_v57 = vpop.xlane.xlu1 %601 }
 0x196   : > { %842 = vrsqrt.f32 %v618_v54 }
 0x199   : > { %v624_v55 = vpop.xlane.xlu0 %623  ;;  %v614_v60 = vpop.xlane.xlu1 %613 }
 0x19a   : > { %844 = vrsqrt.f32 %v624_v55 }
 0x1a0   : > { %v843_v56 = vpop.eup %842 }
 0x1a1   : > { %v620_v58 = vmin.f32 %v843_v56, 1e+12 }
 0x1a3   : > { %v627_v62 = vmul.f32 %v620_v58, %v602_v57 }
 0x1a4   : > { %v845_v59 = vpop.eup %844 }
 0x1a5   : > { %v626_v61 = vmin.f32 %v845_v59, 1e+12 }
 0x1a7   : > { %v628_v63 = vmul.f32 %v626_v61, %v614_v60 }
 0x1a9   : > { %v629_v1 = vadd.f32 %v628_v63, %v627_v62 }
 0x1ab   : > { %v637_v2 = vadd.f32 %v749_v0, %v629_v1 }
 0x1ad   : > { %v750_v3 = vmul.f32 -1.442695, %v637_v2 }
 0x1af   : > { %846 = vpow2.f32 %v750_v3 }
 0x1b9   : > { %v847_v4 = vpop.eup %846 }
 0x1ba   : > { %v641_v5 = vadd.f32 1.0, %v847_v4 }
 0x1bc   : > { %848 = vrcp.f32 %v641_v5 }
 0x1c6   : > { %v849_v6 = vpop.eup %848 }
 0x1c7   : > { %645 = vst.msk [vmem:[%s295_s24] sm:$0xff] %vm644_vm3, %v849_v6 }
 0x1c8 PF: > { %s19_s26 = sadd.s32 1, %s856_s26  }
 0x1c9   : > { %p16_p4 = scmp.ge.s32.totalorder %s19_s26, 4  }
 0x1cb   :  { %18 = sbr.rel (!%p16_p4) target bundleno = 3 (0x3), region = 81 }

</bundles_post_ra>
